<compile_context>
chip_gen: v6e
topology: v6e:2x2x1
jax: 0.10.0
libtpu: 0.0.40
codegen_flags: <defaults>
</compile_context>

<pallas_src>
import numpy as np
import jax
import jax.numpy as jnp
from jax.experimental import pallas as pl
from jax.experimental.pallas import tpu as pltpu


def _round_up(x, m):
    return ((x + m - 1) // m) * m


def classifier_eval(pred, label, taskNum, classNum, *, vmem_budget_bytes=16 << 20):
    """Pallas implementation of ClassifierEval.forward."""
    # ---- wrapper-side layout (reshape is free; one transpose pass over pred) ----
    # TODO(synk): the (B,T,C)->(T,C,B) transpose is one extra HBM pass over pred; it
    # could potentially be folded into the pallas_call via allow_input_fusion.
    predMat = jnp.reshape(pred, (-1, taskNum, classNum))
    if not jnp.issubdtype(predMat.dtype, jnp.floating):
        predMat = predMat.astype(jnp.float32)
    labelMat = label.astype(jnp.int32)                    # (B, T)
    batchNum = predMat.shape[0]

    pred_tcb = jnp.transpose(predMat, (1, 2, 0))          # (T, C, B)  batch lane-dense
    label_tb = jnp.transpose(labelMat, (1, 0))            # (T, B)

    # pad only to a 128-lane multiple (skipped when already aligned); the batch
    # remainder inside a tile is handled by the in-kernel mask, not by padding.
    b_pad = _round_up(batchNum, 128)
    if b_pad != batchNum:
        extra = b_pad - batchNum
        pred_tcb = jnp.pad(pred_tcb, ((0, 0), (0, 0), (0, extra)))
        label_tb = jnp.pad(label_tb, ((0, 0), (0, extra)))

    itemsize = pred_tcb.dtype.itemsize
    # per-batch-lane VMEM footprint estimate: double-buffered pred/label/predMax
    # plus ~6 f32 (T,C,tb)-shaped in-kernel temporaries (iota, compares, one-hots).
    per_lane = taskNum * (2 * classNum * itemsize + 2 * 4 + 2 * 4 + 6 * classNum * 4)
    tb = max(128, (vmem_budget_bytes // per_lane) // 128 * 128)
    tb = min(tb, b_pad)

    n_tiles = pl.cdiv(b_pad, tb)
    n_part = 2 if n_tiles >= 2 else 1     # megacore split on v7x; neutral on 1-TC chips
    n_bpp = pl.cdiv(n_tiles, n_part)
    last_tile = n_tiles - 1
    covered = n_part * n_bpp * tb
    need_mask = covered != batchNum

    if n_part * n_bpp > n_tiles:
        # phantom trailing tile on the last partition: clamp it onto the last real
        # tile (its contribution is fully masked out in-kernel; its predMax write
        # just rewrites identical values).
        def bidx(p, b):
            return jnp.minimum(p * n_bpp + b, last_tile)
    else:
        def bidx(p, b):
            return p * n_bpp + b

    def kernel(pred_ref, label_ref, predmax_ref, mat_ref, pos_ref):
        # pred_ref   : (T, C, tb)        float  -- batch on lanes
        # label_ref  : (T, tb)           int32
        # predmax_ref: (T, tb)           int32  -- per batch-tile output block
        # mat_ref    : (1, T, C, C)      f32    -- per-partition resident accumulator
        # pos_ref    : (1, 1, T)         f32    -- per-partition resident accumulator
        @pl.when(pl.program_id(1) == 0)
        def _():
            mat_ref[...] = jnp.zeros_like(mat_ref)
            pos_ref[...] = jnp.zeros_like(pos_ref)

        pv = pred_ref[...]
        lbl = label_ref[...]
        T, C, TB = pv.shape

        # argmax over the class (sublane) axis, first occurrence on ties (np.argmax).
        # TODO(synk): rows containing NaN yield class index C (row dropped) instead of
        # np.argmax's NaN-as-max behavior.
        class_iota = jax.lax.broadcasted_iota(jnp.int32, (T, C, TB), 1)
        max_val = jnp.max(pv, axis=1, keepdims=True)                 # (T, 1, TB)
        is_max = pv == max_val
        pm = jnp.min(jnp.where(is_max, class_iota, C), axis=1).astype(jnp.int32)
        predmax_ref[...] = pm                                        # (T, TB)

        onehot_p = class_iota == pm[:, None, :]                      # (T, C, TB) bool
        onehot_l = class_iota == lbl[:, None, :]                     # (T, C, TB) bool
        correct = pm == lbl                                          # (T, TB)    bool

        if need_mask:
            tile = pl.program_id(0) * n_bpp + pl.program_id(1)
            off = tile * tb
            lane = jax.lax.broadcasted_iota(jnp.int32, (T, TB), 1)
            valid = (off + lane) < batchNum
            onehot_p = onehot_p & valid[:, None, :]   # masking one operand suffices
            correct = correct & valid

        # f32 {0,1} one-hots: exact counts, no bf16 sublane relayout, MXU has slack.
        onehot_p = onehot_p.astype(jnp.float32)
        onehot_l = onehot_l.astype(jnp.float32)

        # mat[t,p,l] += sum_b onehot_p[t,p,b] * onehot_l[t,l,b]  (MXU, contract batch)
        mat_ref[...] += jnp.einsum(
            "tpb,tlb->tpl", onehot_p, onehot_l,
            preferred_element_type=jnp.float32)[None]

        # pos[t] += #{b : predMax[b,t] == label[b,t]}  (== trace of per-task mat)
        pos_ref[...] += jnp.sum(correct.astype(jnp.float32), axis=-1)[None, None, :]

    cost = pl.CostEstimate(
        flops=2 * covered * taskNum * classNum * classNum,
        transcendentals=0,
        bytes_accessed=(b_pad * taskNum * classNum * itemsize       # pred
                        + b_pad * taskNum * 4                       # label
                        + b_pad * taskNum * 4                       # predMax
                        + n_part * taskNum * classNum * classNum * 4
                        + n_part * taskNum * 4))

    predmax_tb, mat_parts, pos_parts = pl.pallas_call(
        kernel,
        out_shape=(
            jax.ShapeDtypeStruct((taskNum, b_pad), jnp.int32),
            jax.ShapeDtypeStruct((n_part, taskNum, classNum, classNum), jnp.float32),
            jax.ShapeDtypeStruct((n_part, 1, taskNum), jnp.float32),
        ),
        grid_spec=pltpu.PrefetchScalarGridSpec(
            num_scalar_prefetch=0,
            grid=(n_part, n_bpp),
            in_specs=[
                pl.BlockSpec((taskNum, classNum, tb),
                             lambda p, b: (0, 0, bidx(p, b))),
                pl.BlockSpec((taskNum, tb),
                             lambda p, b: (0, bidx(p, b))),
            ],
            out_specs=(
                pl.BlockSpec((taskNum, tb),
                             lambda p, b: (0, bidx(p, b))),
                pl.BlockSpec((1, taskNum, classNum, classNum),
                             lambda p, b: (p, 0, 0, 0)),
                pl.BlockSpec((1, 1, taskNum),
                             lambda p, b: (p, 0, 0)),
            ),
        ),
        compiler_params=pltpu.CompilerParams(
            dimension_semantics=("parallel", "arbitrary"),
            vmem_limit_bytes=32 * 1024 * 1024),
        cost_estimate=cost,
    )(pred_tcb, label_tb)

    mat = jnp.sum(mat_parts, axis=0)                          # (T, C, C)
    pos = jnp.sum(pos_parts, axis=0)[0]                       # (T,)
    predMax = jnp.transpose(predmax_tb[:, :batchNum], (1, 0))  # (B, T) i32
    evalDict = {"pos": pos, "mat": mat}
    return evalDict, predMax, labelMat


def _numpy_reference(pred, label, taskNum, classNum):
    predMat = np.reshape(np.asarray(pred), (-1, taskNum, classNum))
    labelMat = np.asarray(label)
    batchNum = labelMat.shape[0]
    pos = np.zeros(taskNum)
    mat = np.zeros((taskNum, classNum, classNum))
    predMax = np.zeros((batchNum, taskNum), dtype=int)
    for taskIdx in range(taskNum):
        for batchIdx in range(batchNum):
            predMax[batchIdx, taskIdx] = np.argmax(predMat[batchIdx, taskIdx, :])
            mat[taskIdx, predMax[batchIdx, taskIdx], labelMat[batchIdx, taskIdx]] += 1
        pos[taskIdx] = np.trace(mat[taskIdx, :, :])
    return pos, mat, predMax


if __name__ == "__main__":
    taskNum, classNum, batch = 4, 8, 8

    key = jax.random.PRNGKey(0)
    k_pred, k_label = jax.random.split(key)
    pred = jax.random.normal(k_pred, (batch, taskNum * classNum), dtype=jnp.float32)
    label = jax.random.randint(k_label, (batch, taskNum), 0, classNum, dtype=jnp.int32)

    evalDict, predMax, labelMat = classifier_eval(pred, label, taskNum, classNum)
    jax.block_until_ready((evalDict["pos"], evalDict["mat"], predMax, labelMat))

    # quiet correctness check against the original numpy forward pass
    ref_pos, ref_mat, ref_predMax = _numpy_reference(pred, label, taskNum, classNum)
    assert np.array_equal(np.asarray(predMax), ref_predMax)
    assert np.allclose(np.asarray(evalDict["mat"]), ref_mat)
    assert np.allclose(np.asarray(evalDict["pos"]), ref_pos)

    print("KERNEL_OK")
</pallas_src>

<mosaic_0001>
module attributes {stable_mosaic.version = 11 : i64} {
  func.func @kernel(%arg0: i32, %arg1: i32, %arg2: memref<4x8x128xf32, #tpu.memory_space<vmem>>, %arg3: memref<4x128xi32, #tpu.memory_space<vmem>>, %arg4: memref<4x128xi32, #tpu.memory_space<vmem>>, %arg5: memref<1x4x8x8xf32, #tpu.memory_space<vmem>>, %arg6: memref<1x1x4xf32, #tpu.memory_space<vmem>>) attributes {dimension_semantics = [#tpu.dimension_semantics<parallel>, #tpu.dimension_semantics<arbitrary>], iteration_bounds = array<i64: 1, 1>, scalar_prefetch = 0 : i64, scratch_operands = 0 : i64, tpu.core_type = #tpu.core_type<tc>, window_params = [{transform_indices = @transform_0, window_bounds = array<i64: 4, 8, 128>}, {transform_indices = @transform_1, window_bounds = array<i64: 4, 128>}, {transform_indices = @transform_2, window_bounds = array<i64: 4, 128>}, {transform_indices = @transform_3, window_bounds = array<i64: 1, 4, 8, 8>}, {transform_indices = @transform_4, window_bounds = array<i64: 1, 1, 4>}]} {
    %c0_i32 = arith.constant 0 : i32
    %0 = arith.cmpi eq, %arg1, %c0_i32 : i32
    %1 = arith.extui %0 : i1 to i32
    %c0_i32_0 = arith.constant 0 : i32
    %2 = arith.cmpi ne, %1, %c0_i32_0 : i32
    scf.if %2 {
      %cst_25 = arith.constant 0.000000e+00 : f32
      %49 = vector.broadcast %cst_25 : f32 to vector<1x4x8x8xf32>
      %c0_26 = arith.constant 0 : index
      %c0_27 = arith.constant 0 : index
      %c0_28 = arith.constant 0 : index
      %c0_29 = arith.constant 0 : index
      %50 = vector.load %arg5[%c0_26, %c0_27, %c0_28, %c0_29] : memref<1x4x8x8xf32, #tpu.memory_space<vmem>>, vector<1x4x8x8xf32>
      tpu.vector_store %arg5[%c0_26, %c0_27, %c0_28, %c0_29], %49 {strides = array<i32>} : memref<1x4x8x8xf32, #tpu.memory_space<vmem>>, vector<1x4x8x8xf32>,
      %cst_30 = arith.constant 0.000000e+00 : f32
      %51 = vector.broadcast %cst_30 : f32 to vector<1x1x4xf32>
      %c0_31 = arith.constant 0 : index
      %c0_32 = arith.constant 0 : index
      %c0_33 = arith.constant 0 : index
      %52 = vector.load %arg6[%c0_31, %c0_32, %c0_33] : memref<1x1x4xf32, #tpu.memory_space<vmem>>, vector<1x1x4xf32>
      tpu.vector_store %arg6[%c0_31, %c0_32, %c0_33], %51 {strides = array<i32>} : memref<1x1x4xf32, #tpu.memory_space<vmem>>, vector<1x1x4xf32>,
    } else {
    }
    %c0 = arith.constant 0 : index
    %c0_1 = arith.constant 0 : index
    %c0_2 = arith.constant 0 : index
    %3 = vector.load %arg2[%c0, %c0_1, %c0_2] : memref<4x8x128xf32, #tpu.memory_space<vmem>>, vector<4x8x128xf32>
    %c0_3 = arith.constant 0 : index
    %c0_4 = arith.constant 0 : index
    %4 = vector.load %arg3[%c0_3, %c0_4] : memref<4x128xi32, #tpu.memory_space<vmem>>, vector<4x128xi32>
    %5 = tpu.iota {dimensions = array<i32: 1>} : vector<4x8x128xi32>
    %cst = arith.constant dense<0xFF800000> : vector<4x128xf32>
    %6 = vector.multi_reduction <maximumf>, %3, %cst [1] : vector<4x8x128xf32> to vector<4x128xf32>
    %7 = vector.shape_cast %6 : vector<4x128xf32> to vector<4x1x128xf32>
    %8 = vector.broadcast %7 : vector<4x1x128xf32> to vector<4x8x128xf32>
    %9 = arith.cmpf oeq, %3, %8 : vector<4x8x128xf32>
    %c8_i32 = arith.constant 8 : i32
    %10 = vector.broadcast %c8_i32 : i32 to vector<4x8x128xi32>
    %11 = arith.select %9, %5, %10 : vector<4x8x128xi1>, vector<4x8x128xi32>
    %cst_5 = arith.constant dense<2147483647> : vector<4x128xi32>
    %12 = vector.multi_reduction <minsi>, %11, %cst_5 [1] : vector<4x8x128xi32> to vector<4x128xi32>
    %c0_6 = arith.constant 0 : index
    %c0_7 = arith.constant 0 : index
    %13 = vector.load %arg4[%c0_6, %c0_7] : memref<4x128xi32, #tpu.memory_space<vmem>>, vector<4x128xi32>
    tpu.vector_store %arg4[%c0_6, %c0_7], %12 {strides = array<i32>} : memref<4x128xi32, #tpu.memory_space<vmem>>, vector<4x128xi32>,
    %14 = vector.shape_cast %12 : vector<4x128xi32> to vector<4x1x128xi32>
    %15 = vector.broadcast %14 : vector<4x1x128xi32> to vector<4x8x128xi32>
    %16 = arith.cmpi eq, %5, %15 : vector<4x8x128xi32>
    %17 = vector.shape_cast %4 : vector<4x128xi32> to vector<4x1x128xi32>
    %18 = vector.broadcast %17 : vector<4x1x128xi32> to vector<4x8x128xi32>
    %19 = arith.cmpi eq, %5, %18 : vector<4x8x128xi32>
    %20 = arith.cmpi eq, %12, %4 : vector<4x128xi32>
    %c1_i32 = arith.constant 1 : i32
    %21 = arith.muli %arg0, %c1_i32 : i32
    %22 = arith.addi %21, %arg1 : i32
    %c128_i32 = arith.constant 128 : i32
    %23 = arith.muli %22, %c128_i32 : i32
    %24 = tpu.iota {dimensions = array<i32: 1>} : vector<4x128xi32>
    %25 = vector.broadcast %23 : i32 to vector<4x128xi32>
    %26 = arith.addi %25, %24 : vector<4x128xi32>
    %c8_i32_8 = arith.constant 8 : i32
    %27 = vector.broadcast %c8_i32_8 : i32 to vector<4x128xi32>
    %28 = arith.cmpi slt, %26, %27 : vector<4x128xi32>
    %29 = vector.shape_cast %28 : vector<4x128xi1> to vector<4x1x128xi1>
    %30 = vector.broadcast %29 : vector<4x1x128xi1> to vector<4x8x128xi1>
    %31 = arith.andi %16, %30 : vector<4x8x128xi1>
    %32 = arith.andi %20, %28 : vector<4x128xi1>
    %33 = arith.extui %31 : vector<4x8x128xi1> to vector<4x8x128xi32>
    %34 = arith.sitofp %33 : vector<4x8x128xi32> to vector<4x8x128xf32>
    %35 = arith.extui %19 : vector<4x8x128xi1> to vector<4x8x128xi32>
    %36 = arith.sitofp %35 : vector<4x8x128xi32> to vector<4x8x128xf32>
    %c0_9 = arith.constant 0 : index
    %c0_10 = arith.constant 0 : index
    %c0_11 = arith.constant 0 : index
    %c0_12 = arith.constant 0 : index
    %37 = vector.load %arg5[%c0_9, %c0_10, %c0_11, %c0_12] : memref<1x4x8x8xf32, #tpu.memory_space<vmem>>, vector<1x4x8x8xf32>
    "tpu.trace_start"() <{level = 10 : i32, message = "tpb,tlb->tpl"}> : () -> ()
    %cst_13 = arith.constant dense<0.000000e+00> : vector<4x8x8xf32>
    %38 = tpu.matmul %34, %36, %cst_13 {dimension_numbers = #tpu.dot_dimension_numbers<[2], [2], [1], [1], [0, 0, 0, 1, 1, 1], [0], [0]>} : vector<4x8x128xf32>, vector<4x8x128xf32>, vector<4x8x8xf32> -> vector<4x8x8xf32>
    "tpu.trace_stop"() : () -> ()
    %39 = vector.shape_cast %38 : vector<4x8x8xf32> to vector<1x4x8x8xf32>
    %40 = arith.addf %37, %39 : vector<1x4x8x8xf32>
    %c0_14 = arith.constant 0 : index
    %c0_15 = arith.constant 0 : index
    %c0_16 = arith.constant 0 : index
    %c0_17 = arith.constant 0 : index
    %41 = vector.load %arg5[%c0_14, %c0_15, %c0_16, %c0_17] : memref<1x4x8x8xf32, #tpu.memory_space<vmem>>, vector<1x4x8x8xf32>
    tpu.vector_store %arg5[%c0_14, %c0_15, %c0_16, %c0_17], %40 {strides = array<i32>} : memref<1x4x8x8xf32, #tpu.memory_space<vmem>>, vector<1x4x8x8xf32>,
    %c0_18 = arith.constant 0 : index
    %c0_19 = arith.constant 0 : index
    %c0_20 = arith.constant 0 : index
    %42 = vector.load %arg6[%c0_18, %c0_19, %c0_20] : memref<1x1x4xf32, #tpu.memory_space<vmem>>, vector<1x1x4xf32>
    %43 = arith.extui %32 : vector<4x128xi1> to vector<4x128xi32>
    %44 = arith.sitofp %43 : vector<4x128xi32> to vector<4x128xf32>
    %cst_21 = arith.constant dense<0.000000e+00> : vector<4xf32>
    %45 = vector.multi_reduction <add>, %44, %cst_21 [1] : vector<4x128xf32> to vector<4xf32>
    %46 = vector.shape_cast %45 : vector<4xf32> to vector<1x1x4xf32>
    %47 = arith.addf %42, %46 : vector<1x1x4xf32>
    %c0_22 = arith.constant 0 : index
    %c0_23 = arith.constant 0 : index
    %c0_24 = arith.constant 0 : index
    %48 = vector.load %arg6[%c0_22, %c0_23, %c0_24] : memref<1x1x4xf32, #tpu.memory_space<vmem>>, vector<1x1x4xf32>
    tpu.vector_store %arg6[%c0_22, %c0_23, %c0_24], %47 {strides = array<i32>} : memref<1x1x4xf32, #tpu.memory_space<vmem>>, vector<1x1x4xf32>,
    return
  }
  func.func @transform_0(%arg0: i32, %arg1: i32) -> (i32, i32, i32) {
    %c1_i32 = arith.constant 1 : i32
    %0 = arith.muli %arg0, %c1_i32 : i32
    %1 = arith.addi %0, %arg1 : i32
    %c0_i32 = arith.constant 0 : i32
    %c0_i32_0 = arith.constant 0 : i32
    %c0_i32_1 = arith.constant 0 : i32
    return %c0_i32, %c0_i32_0, %1 : i32, i32, i32
  }
  func.func @transform_1(%arg0: i32, %arg1: i32) -> (i32, i32) {
    %c1_i32 = arith.constant 1 : i32
    %0 = arith.muli %arg0, %c1_i32 : i32
    %1 = arith.addi %0, %arg1 : i32
    %c0_i32 = arith.constant 0 : i32
    %c0_i32_0 = arith.constant 0 : i32
    return %c0_i32, %1 : i32, i32
  }
  func.func @transform_2(%arg0: i32, %arg1: i32) -> (i32, i32) {
    %c1_i32 = arith.constant 1 : i32
    %0 = arith.muli %arg0, %c1_i32 : i32
    %1 = arith.addi %0, %arg1 : i32
    %c0_i32 = arith.constant 0 : i32
    %c0_i32_0 = arith.constant 0 : i32
    return %c0_i32, %1 : i32, i32
  }
  func.func @transform_3(%arg0: i32, %arg1: i32) -> (i32, i32, i32, i32) {
    %c0_i32 = arith.constant 0 : i32
    %c0_i32_0 = arith.constant 0 : i32
    %c0_i32_1 = arith.constant 0 : i32
    %c0_i32_2 = arith.constant 0 : i32
    return %arg0, %c0_i32, %c0_i32_0, %c0_i32_1 : i32, i32, i32, i32
  }
  func.func @transform_4(%arg0: i32, %arg1: i32) -> (i32, i32, i32) {
    %c0_i32 = arith.constant 0 : i32
    %c0_i32_0 = arith.constant 0 : i32
    %c0_i32_1 = arith.constant 0 : i32
    return %arg0, %c0_i32, %c0_i32_0 : i32, i32, i32
  }
}

</mosaic_0001>

<bundles_post_ra>
// kernel: tpu_custom_call.1
= control target key start
LH: loop header
LB: loop body
LE: loop exit
PB: predicated region body
PF: predicated region fallthrough
CT: control target
= control target key end

     0   :  { %10 = vsyncpa [#allocation3], 0  ;;  %s1137_s0 = inlined_call_operand.hbm [shape: f32[4,8,128], index: 0, kind: input, shape index: {}]   ;;  %s1138_s1 = inlined_call_operand.hbm [shape: s32[4,128], index: 1, kind: input, shape index: {}]   ;;  %s1139_s2 = inlined_call_operand.hbm [shape: s32[4,128], index: 2, kind: output, shape index: {0}]   ;;  %s1140_s3 = inlined_call_operand.hbm [shape: f32[1,4,8,8], index: 3, kind: output, shape index: {1}]   ;;  %s1141_s4 = inlined_call_operand.hbm [shape: f32[1,1,4], index: 4, kind: output, shape index: {2}]  }
   0x1   :  { %11 = vsyncpa [#allocation6], 0 }
   0x2   :  { %12 = vsyncpa [#allocation4], 0 }
   0x3   :  { %13 = vsyncpa [#allocation9], 0  ;;  %s883_s15 = smov [#allocation2]  }
   0x4   :  { %s22_s16 = sshll.u32 %s883_s15, 4  ;;  %s23_s16 = int_to_ptr.vmem [resolvable:$true] %s22_s16 }
   0x5   :  { %s783_s17 = scalar_lea.vmem %s23_s16, 512  ;;  %p788_p1 = scmp.lt.s32.totalorder %s23_s16, %s23_s16 }
   0x6   :  { %p784_p0 = scmp.ne.s32.totalorder %s23_s16, %s783_s17  ;;  %p789_p2 = scmp.lt.s32.totalorder %s783_s17, %s783_s17 }
   0x8   :  { %p790_p3 = por %p789_p2, %p788_p1 }
   0xa   :  { %p791_p4 = pnand %p790_p3, %p784_p0 }
   0xc   :  { %794 = shalt.err (!%p791_p4)
}
   0xd   :  { %s884_s18 = smov 128   ;;  %s885_s19 = smov 8  }
   0xe   :  { %28 = dma.hbm_to_vmem [thread:$0]  %s1137_s0, 512, %s23_s16, [#allocation3], %s884_s18, %s884_s18, %s885_s19  }
   0xf   :  { %s886_s22 = smov [#allocation5]  }
  0x10   :  { %s38_s23 = sshll.u32 %s886_s22, 4  ;;  %s39_s23 = int_to_ptr.vmem [resolvable:$true] %s38_s23 }
  0x11   :  { %s803_s24 = scalar_lea.vmem %s39_s23, 64  ;;  %p808_p6 = scmp.lt.s32.totalorder %s39_s23, %s39_s23 }
  0x12   :  { %p804_p5 = scmp.ne.s32.totalorder %s39_s23, %s803_s24  ;;  %p809_p7 = scmp.lt.s32.totalorder %s803_s24, %s803_s24 }
  0x14   :  { %p810_p8 = por %p809_p7, %p808_p6 }
  0x16   :  { %p811_p9 = pnand %p810_p8, %p804_p5 }
  0x18   :  { %814 = shalt.err (!%p811_p9)
}
  0x19   :  { %41 = dma.hbm_to_vmem [thread:$0]  %s1138_s1, 64, %s39_s23, [#allocation6]  }
  0x1a   :  { %875 = dma.done.wait [#allocation3], 512  }
  0x1b   :  { %876 = vsyncadd [#allocation3], 4294966784 }
  0x1c   :  { %877 = dma.done.wait [#allocation6], 64  }
  0x1d   :  { %878 = vsyncadd [#allocation6], 4294967232  ;;  %v67_v0 = vlaneseq  ;;  %v887_v1 = vmov 0.0   ;;  %v888_v2 = vmov 1966171168   ;;  %vm1142_vm0 = vmmov 0  }
  0x1e   :  { %742 = vmatprep.subr.mxu0 %v887_v1  ;;  %747 = vmatprep.subr.mxu1 %v887_v1  ;;  %v149_v3 = vunpack.c.l.s4 %v888_v2  ;;  %v890_v7 = vmov 0   ;;  %v62_v9 = vld [vmem:[#allocation2] sm:$0xff]  ;;  %v63_v10 = vld [vmem:[#allocation2 + $0x8] sm:$0xff]  ;;  %v64_v11 = vld [vmem:[#allocation2 + $0x10] sm:$0xff]  ;;  %v891_v50 = vmov 1.0   ;;  %s892_s0 = smov [#allocation7]  }
  0x1f   :  { %v931_v4 = vand.u32 127, %v67_v0  ;;  %744 = vmatprep.mubr.msk.f32.mxu0 %vm1142_vm0, %v887_v1  ;;  %749 = vmatprep.mubr.msk.f32.mxu1 %vm1142_vm0, %v887_v1  ;;  %v937_v5 = vshrl.u32 %v67_v0, 7  ;;  %v65_v12 = vld [vmem:[#allocation2 + $0x18] sm:$0xff]  ;;  %v69_v13 = vrot.slane %v62_v9, 4  ;;  %v75_v14 = vrot.slane %v63_v10, 4  ;;  %s675_s1 = sshll.u32 %s892_s0, 4  ;;  %s676_s1 = int_to_ptr.vmem [resolvable:$true] %s675_s1 }
  0x20   :  { %v150_v6 = vunpack.c.0.s8 %v149_v3  ;;  %774 = vset.pattern.permute.xlu0 %v890_v7  ;;  %v81_v15 = vrot.slane %v64_v11, 4  ;;  %v947_v17 = vld [vmem:[#allocation5] sm:$0xf]  ;;  %v87_v18 = vrot.slane %v65_v12, 4  ;;  %s815_s27 = scalar_lea.vmem %s676_s1, 64  ;;  %p820_p11 = scmp.lt.s32.totalorder %s676_s1, %s676_s1 }
  0x21   :  { %vm205_vm1 = vcmp.lt.s32.totalorder %v931_v4, 8  ;;  %v70_v19 = vmax.f32 %v62_v9, %v69_v13  ;;  %v76_v20 = vmax.f32 %v63_v10, %v75_v14  ;;  %v952_v24 = vsub.s32 0, %v937_v5  ;;  %p816_p10 = scmp.ne.s32.totalorder %s676_s1, %s815_s27  ;;  %p821_p12 = scmp.lt.s32.totalorder %s815_s27, %s815_s27 }
  0x22   :  { %v941_v8 = vsub.s32 %v150_v6, %v937_v5  ;;  %v206_v16 = vsel %vm205_vm1, 1, %v890_v7  ;;  %v82_v21 = vmax.f32 %v64_v11, %v81_v15  ;;  %v88_v23 = vmax.f32 %v65_v12, %v87_v18 }
  0x23   :  { %v71_v26 = vrot.slane %v70_v19, 2  ;;  %v77_v27 = vrot.slane %v76_v20, 2  ;;  %v192_v43 = vrot.slane %v947_v17, 1  ;;  %v193_v49 = vrot.slane %v947_v17, 2  ;;  %p822_p13 = por %p821_p12, %p820_p11 }
  0x24   :  { %v154_v22 = vrot.slane %v947_v17, %v941_v8  ;;  %v213_v25 = vrot.slane %v206_v16, %v941_v8  ;;  %v83_v28 = vrot.slane %v82_v21, 2  ;;  %v89_v30 = vrot.slane %v88_v23, 2 }
  0x25   :  { %v72_v33 = vmax.f32 %v70_v19, %v71_v26  ;;  %v78_v34 = vmax.f32 %v76_v20, %v77_v27  ;;  %v194_v52 = vrot.slane %v947_v17, 3  ;;  %p823_p0 = pnand %p822_p13, %p816_p10 }
  0x26   :  { %v956_v29 = vrot.slane %v154_v22, %v941_v8  ;;  %v155_v31 = vcombine.high %v154_v22, %v154_v22  ;;  %v221_v32 = vrot.slane %v213_v25, %v941_v8  ;;  %v84_v35 = vmax.f32 %v82_v21, %v83_v28 }
  0x27   :  { %v90_v36 = vmax.f32 %v88_v23, %v89_v30  ;;  %v214_v39 = vcombine.high %v213_v25, %v213_v25  ;;  %v73_v40 = vrot.slane %v72_v33, 1  ;;  %v79_v41 = vrot.slane %v78_v34, 1 }
  0x28   :  { %v175_v37 = vrot.slane %v956_v29, %v952_v24  ;;  %v962_v38 = vrot.slane %v155_v31, %v941_v8  ;;  %v85_v42 = vrot.slane %v84_v35, 1  ;;  %vm231_vm3 = vcmp.ne.s32.totalorder %v221_v32, 0 }
  0x29   :  { %v91_v44 = vrot.slane %v90_v36, 1  ;;  %v74_v46 = vmax.f32 %v72_v33, %v73_v40  ;;  %v80_v47 = vmax.f32 %v78_v34, %v79_v41  ;;  %v973_v53 = vrot.slane %v214_v39, %v941_v8 }
  0x2a   :  { %vm188_vm2 = vcmp.eq.s32.totalorder %v937_v5, %v175_v37  ;;  %v179_v45 = vrot.slane %v962_v38, %v952_v24  ;;  %v86_v48 = vmax.f32 %v84_v35, %v85_v42  ;;  %v979_v54 = vsel %vm231_vm3, 1, %v890_v7 }
  0x2b   :  { %743 = vmatpush3.xpose.msk.msra.mxu0 %vm188_vm2, %v891_v50  ;;  %v92_v51 = vmax.f32 %v90_v36, %v91_v44  ;;  %vm93_vm5 = vcmp.eq.f32.partialorder %v62_v9, %v74_v46  ;;  %vm94_vm6 = vcmp.eq.f32.partialorder %v63_v10, %v80_v47  ;;  %v170_v63 = vcombine.high %v956_v29, %v956_v29 }
  0x2c   :  { %vm189_vm4 = vcmp.eq.s32.totalorder %v937_v5, %v179_v45  ;;  %752 = vmatprep.subr.mxu0 %v887_v1  ;;  %vm95_vm7 = vcmp.eq.f32.partialorder %v64_v11, %v86_v48  ;;  %v97_v55 = vsel %vm93_vm5, %v937_v5, 8  ;;  %v98_v56 = vsel %vm94_vm6, %v937_v5, 8 }
  0x2d   :  { %748 = vmatpush3.xpose.msk.msra.mxu1 %vm189_vm4, %v891_v50  ;;  %vm96_vm8 = vcmp.eq.f32.partialorder %v65_v12, %v92_v51  ;;  %v99_v57 = vsel %vm95_vm7, %v937_v5, 8  ;;  %v101_v59 = vrot.slane %v97_v55, 4  ;;  %v110_v60 = vrot.slane %v98_v56, 4 }
  0x2e   :  { %757 = vmatprep.subr.mxu1 %v887_v1  ;;  %v100_v58 = vsel %vm96_vm8, %v937_v5, 8  ;;  %v119_v61 = vrot.slane %v99_v57, 4  ;;  %v242_v0 = vrot.slane %v979_v54, %v952_v24  ;;  %vm232_vm9 = vcmp.ne.s32.totalorder %v973_v53, 0 }
  0x2f   :  { %v128_v62 = vrot.slane %v100_v58, 4  ;;  %vm102_vm10 = vcmp.lt.s32.totalorder %v97_v55, %v101_v59  ;;  %vm111_vm11 = vcmp.lt.s32.totalorder %v98_v56, %v110_v60  ;;  %v229_v2 = vcombine.high %v221_v32, %v221_v32 }
  0x30   :  { %vm120_vm12 = vcmp.lt.s32.totalorder %v99_v57, %v119_v61  ;;  %v103_v3 = vsel %vm102_vm10, %v97_v55, %v101_v59  ;;  %v112_v6 = vsel %vm111_vm11, %v98_v56, %v110_v60  ;;  %v171_v15 = vcombine.high %v962_v38, %v962_v38 }
  0x31   :  { %v121_v9 = vsel %vm120_vm12, %v99_v57, %v119_v61  ;;  %vm129_vm13 = vcmp.lt.s32.totalorder %v100_v58, %v128_v62  ;;  %v104_v10 = vrot.slane %v103_v3, 2  ;;  %v113_v11 = vrot.slane %v112_v6, 2 }
  0x32   :  { %v122_v12 = vrot.slane %v121_v9, 2  ;;  %v130_v13 = vsel %vm129_vm13, %v100_v58, %v128_v62  ;;  %v236_v16 = vsel %vm232_vm9, 1, %v890_v7  ;;  %vm233_vm14 = vcmp.ne.s32.totalorder %v229_v2, 0 }
  0x33   :  { %v131_v14 = vrot.slane %v130_v13, 2  ;;  %vm105_vm15 = vcmp.lt.s32.totalorder %v103_v3, %v104_v10  ;;  %vm114_vm2 = vcmp.lt.s32.totalorder %v112_v6, %v113_v11  ;;  %v237_v18 = vsel %vm233_vm14, 1, %v890_v7 }
  0x34   :  { %vm123_vm3 = vcmp.lt.s32.totalorder %v121_v9, %v122_v12  ;;  %v106_v19 = vsel %vm105_vm15, %v103_v3, %v104_v10  ;;  %v115_v20 = vsel %vm114_vm2, %v112_v6, %v113_v11  ;;  %vm137_vm5 = vcmask 1041409  }
  0x35   :  { %v124_v21 = vsel %vm123_vm3, %v121_v9, %v122_v12  ;;  %vm132_vm4 = vcmp.lt.s32.totalorder %v130_v13, %v131_v14  ;;  %v107_v22 = vrot.slane %v106_v19, 1  ;;  %v116_v23 = vrot.slane %v115_v20, 1 }
  0x36   :  { %v125_v25 = vrot.slane %v124_v21, 1  ;;  %v133_v26 = vsel %vm132_vm4, %v130_v13, %v131_v14  ;;  %vm139_vm6 = vcmask 1042434   ;;  %v246_v28 = vrot.slane %v236_v16, %v952_v24 }
  0x37   :  { %v134_v27 = vrot.slane %v133_v26, 1  ;;  %v183_v29 = vrot.slane %v170_v63, %v952_v24  ;;  %v250_v30 = vrot.slane %v237_v18, %v952_v24  ;;  %vm108_vm8 = vcmp.lt.s32.totalorder %v106_v19, %v107_v22 }
  0x38   :  { %vm117_vm9 = vcmp.lt.s32.totalorder %v115_v20, %v116_v23  ;;  %vm126_vm10 = vcmp.lt.s32.totalorder %v124_v21, %v125_v25  ;;  %v230_v31 = vcombine.high %v973_v53, %v973_v53  ;;  %v1000_v32 = vsel %vm108_vm8, %v106_v19, %v107_v22 }
  0x39   :  { %v1002_v33 = vsel %vm117_vm9, %v115_v20, %v116_v23  ;;  %v1004_v34 = vsel %vm126_vm10, %v124_v21, %v125_v25  ;;  %vm135_vm11 = vcmp.lt.s32.totalorder %v133_v26, %v134_v27  ;;  %vm195_vm12 = vcmp.eq.s32.totalorder %v1000_v32, %v947_v17 }
  0x3a   :  { %v1006_v35 = vsel %vm135_vm11, %v133_v26, %v134_v27  ;;  %vm196_vm13 = vcmp.eq.s32.totalorder %v1002_v33, %v192_v43  ;;  %vm197_vm14 = vcmp.eq.s32.totalorder %v1004_v34, %v193_v49  ;;  %vm263_vm2 = vmand %vm195_vm12, %vm205_vm1  ;;  %vm1025_vm3 = vcmp.eq.s32.totalorder %v242_v0, 1 }
  0x3b   :  { %vm1019_vm15 = vcmp.eq.s32.totalorder %v1006_v35, %v194_v52  ;;  %v187_v38 = vrot.slane %v171_v15, %v952_v24  ;;  %vm264_vm8 = vmand %vm196_vm13, %vm205_vm1  ;;  %vm144_vm9 = vcmp.eq.s32.totalorder %v937_v5, %v1000_v32  ;;  %vm145_vm10 = vcmp.eq.s32.totalorder %v937_v5, %v1002_v33 }
  0x3c   :  { %vm1037_vm11 = vcmp.eq.s32.totalorder %v246_v28, 1  ;;  %vm234_vm12 = vcmp.ne.s32.totalorder %v230_v31, 0  ;;  %vm265_vm0 = vmand %vm197_vm14, %vm205_vm1  ;;  %v730_v39 = vsel %vm263_vm2, 1.0, %v887_v1  ;;  %v731_v40 = vsel %vm264_vm8, 1.0, %v887_v1 }
  0x3d   :  { %vm146_vm13 = vcmp.eq.s32.totalorder %v937_v5, %v1004_v34  ;;  %v238_v41 = vsel %vm234_vm12, 1, %v890_v7  ;;  %vm266_vm7 = vmand %vm1019_vm15, %vm205_vm1  ;;  %v732_v42 = vsel %vm265_vm0, 1.0, %v887_v1  ;;  %v589_v43 = vrot.slane %v731_v40, 7 }
  0x3e   :  { %vm1053_vm4 = vcmp.eq.s32.totalorder %v250_v30, 1  ;;  %v254_v45 = vrot.slane %v238_v41, %v952_v24  ;;  %v733_v46 = vsel %vm266_vm7, 1.0, %v887_v1  ;;  %v591_v47 = vrot.slane %v732_v42, 6  ;;  %vm259_vm14 = vmand %vm144_vm9, %vm1025_vm3 }
  0x3f   :  { %vm191_vm1 = vcmp.eq.s32.totalorder %v937_v5, %v187_v38  ;;  %vm147_vm0 = vcmp.eq.s32.totalorder %v937_v5, %v1006_v35  ;;  %v590_v7 = vsel %vm137_vm5, %v589_v43, %v730_v39  ;;  %v593_v48 = vrot.slane %v733_v46, 5  ;;  %745 = vmatmul.mubr.msk.f32.vlgmr.msra.gmra.mxu0 %vm259_vm14, %v891_v50  ;;  %vm260_vm7 = vmand %vm145_vm10, %vm1037_vm11 }
  0x40   :  { %vm596_vm15 = vcmask 1043456   ;;  %vm258_vm2 = vcmp.eq.s32.totalorder %v254_v45, 1  ;;  %v592_v49 = vsel %vm139_vm6, %v591_v47, %v590_v7  ;;  %750 = vmatmul.mubr.msk.f32.vlgmr.msra.gmra.mxu1 %vm260_vm7, %v891_v50  ;;  %vm1152_vm3 = vcmp.eq.s32.totalorder %v937_v5, %v183_v29  ;;  %vm261_vm8 = vmand %vm146_vm13, %vm1053_vm4 }
  0x41   :  { %753 = vmatpush3.xpose.msk.msra.mxu0 %vm1152_vm3, %v891_v50  ;;  %vm1153_vm9 = vcmask 1043459   ;;  %758 = vmatpush3.xpose.msk.msra.mxu1 %vm191_vm1, %v891_v50  ;;  %vm1154_vm10 = vmmov 0   ;;  %vm262_vm11 = vmand %vm147_vm0, %vm258_vm2  ;;  %vm55_vm12 = vcmask 64512   ;;  %vm60_vm4 = vcmask 24576  }
  0x42   :  { %v594_v51 = vsel %vm1153_vm9, %v593_v48, %v592_v49  ;;  %754 = vmatprep.mubr.msk.f32.mxu0 %vm1154_vm10, %v887_v1  ;;  %759 = vmatprep.mubr.msk.f32.mxu1 %vm1154_vm10, %v887_v1  ;;  %56 = vst.msk [vmem:[#allocation8] sm:$0xff] %vm55_vm12, %v887_v1  ;;  %57 = vst.msk [vmem:[#allocation8 + $0x8] sm:$0xff] %vm55_vm12, %v887_v1  ;;  %v607_v53 = vsub.s32 1, %v937_v5  ;;  %v615_v54 = vsub.s32 3, %v937_v5 }
  0x43   :  { %v597_v52 = vsel %vm596_vm15, %v594_v51, 0.0  ;;  %58 = vst.msk [vmem:[#allocation8 + $0x10] sm:$0xff] %vm55_vm12, %v887_v1  ;;  %59 = vst.msk [vmem:[#allocation8 + $0x18] sm:$0xff] %vm55_vm12, %v887_v1  ;;  %v138_v2 = vsel %vm137_vm5, %v1002_v33, %v1000_v32 }
  0x44   :  { %598 = vadd.xlane.f32.xlu0 %v597_v52  ;;  %755 = vmatmul.mubr.msk.f32.vlgmr.msra.gmra.mxu0 %vm261_vm8, %v891_v50  ;;  %61 = vst.msk [vmem:[#allocation10] sm:$0x1] %vm60_vm4, %v887_v1  ;;  %vm1155_vm13 = vmmov %vm1153_vm9 }
  0x45   :  { %760 = vmatmul.mubr.msk.f32.vlgmr.msra.gmra.mxu1 %vm262_vm11, %v891_v50  ;;  %v611_v50 = vsub.s32 2, %v937_v5 }
  0xcd   :  { %v599_v55 = vpop.xlane.xlu0 %598 }
  0xce   :  { %v604_v56 = vrot.slane %v599_v55, %v952_v24  ;;  %v608_v57 = vrot.slane %v599_v55, %v607_v53  ;;  %v612_v58 = vrot.slane %v599_v55, %v611_v50  ;;  %v616_v59 = vrot.slane %v599_v55, %v615_v54 }
  0xcf   :  { %v140_v24 = vsel %vm139_vm6, %v1004_v34, %v138_v2 }
  0xd0   :  { %v617_v60 = vcombine.low %v604_v56, %v608_v57  ;;  %v618_v61 = vcombine.low %v612_v58, %v616_v59  ;;  %v142_v3 = vsel %vm1155_vm13, %v1006_v35, %v140_v24 }
  0xd1   :  { %143 = vst [vmem:[#allocation7] sm:$0xf] %v142_v3 }
  0xd2   :  { %v625_v62 = vrot.slane %v617_v60, %v941_v8  ;;  %v632_v63 = vrot.slane %v618_v61, %v941_v8 }
  0xd4   :  { %v633_v0 = vcombine.low %v625_v62, %v632_v63 }
  0xd6   :  { %v640_v1 = vrot.slane %v633_v0, %v941_v8 }
  0xd8   :  { %642 = vperm.xlu0 %774, %v640_v1  }
  0xd9   :  { %826 = shalt.err (!%p823_p0)
}
  0xda   :  { %678 = dma.vmem_to_hbm [thread:$0]  %s676_s1, 64, %s1139_s2, [#allocation4]   ;;  %v283_v6 = vld [vmem:[#allocation8] sm:$0xff]  ;;  %v284_v9 = vld [vmem:[#allocation8 + $0x8] sm:$0xff]  ;;  %v285_v15 = vld [vmem:[#allocation8 + $0x10] sm:$0xff] }
  0xdb   :  { %v286_v18 = vld [vmem:[#allocation8 + $0x18] sm:$0xff]  ;;  %s893_s30 = smov [#allocation8]  }
  0xdc   :  { %s684_s5 = sshll.u32 %s893_s30, 4  ;;  %s685_s5 = int_to_ptr.vmem [resolvable:$true] %s684_s5 }
  0xdd   :  { %s835_s2 = scalar_lea.vmem %s685_s5, 512  ;;  %p840_p2 = scmp.lt.s32.totalorder %s685_s5, %s685_s5 }
  0xde   :  { %p836_p1 = scmp.ne.s32.totalorder %s685_s5, %s835_s2  ;;  %p841_p3 = scmp.lt.s32.totalorder %s835_s2, %s835_s2 }
  0xe0   :  { %p842_p4 = por %p841_p3, %p840_p2 }
  0xe2   :  { %p843_p5 = pnand %p842_p4, %p836_p1 }
  0xff   :  { %v353_v10 = vpop.f32.mrf.mxu0 }
 0x100   :  { %v567_v11 = vadd.f32 %v353_v10, %v283_v6  ;;  %v423_v12 = vpop.f32.mrf.mxu1 }
 0x101   :  { %v568_v13 = vadd.f32 %v423_v12, %v284_v9  ;;  %v746_v14 = vpop.f32.mrf.mxu0 }
 0x102   :  { %572 = vst.msk [vmem:[#allocation8] sm:$0xff] %vm55_vm12, %v567_v11  ;;  %v751_v16 = vpop.f32.mrf.mxu1 }
 0x103   :  { %573 = vst.msk [vmem:[#allocation8 + $0x8] sm:$0xff] %vm55_vm12, %v568_v13 }
 0x104   :  { %v493_v19 = vpop.f32.mrf.mxu0 }
 0x105   :  { %v569_v20 = vadd.f32 %v493_v19, %v285_v15  ;;  %v563_v21 = vpop.f32.mrf.mxu1 }
 0x106   :  { %v570_v22 = vadd.f32 %v563_v21, %v286_v18  ;;  %v756_v23 = vpop.f32.mrf.mxu0 }
 0x107   :  { %574 = vst.msk [vmem:[#allocation8 + $0x10] sm:$0xff] %vm55_vm12, %v569_v20  ;;  %v761_v25 = vpop.f32.mrf.mxu1 }
 0x108   :  { %575 = vst.msk [vmem:[#allocation8 + $0x18] sm:$0xff] %vm55_vm12, %v570_v22 }
 0x109   :  { %846 = shalt.err (!%p843_p5)
}
 0x10a   :  { %690 = dma.vmem_to_hbm [thread:$0]  %s685_s5, 512, %s1140_s3, [#allocation9], %s884_s18, %s884_s18, %s885_s19   ;;  %v646_v26 = vsub.s32 %v931_v4, %v937_v5  ;;  %v576_v30 = vld [vmem:[#allocation10] sm:$0x1] }
 0x10b   :  { %s894_s8 = smov [#allocation10]  }
 0x10c   :  { %s697_s9 = sshll.u32 %s894_s8, 4  ;;  %s698_s9 = int_to_ptr.vmem [resolvable:$true] %s697_s9 }
 0x10d   :  { %s855_s10 = scalar_lea.vmem %s698_s9, 16  ;;  %s859_s11 = scalar_lea.vmem %s698_s9, 32 }
 0x10e   :  { %p856_p6 = scmp.ne.s32.totalorder %s698_s9, %s855_s10  ;;  %p860_p7 = scmp.lt.s32.totalorder %s698_s9, %s698_s9 }
 0x10f   :  { %p861_p8 = scmp.lt.s32.totalorder %s859_s11, %s855_s10 }
 0x111   :  { %p862_p9 = por %p861_p8, %p860_p7 }
 0x113   :  { %p863_p10 = pnand %p862_p9, %p856_p6 }
 0x153   :  { %v643_v27 = vpop.permute.xlu0 %642 }
 0x154   :  { %v647_v28 = vrot.slane %v643_v27, %v646_v26 }
 0x156   :  { %v654_v29 = vrot.slane %v647_v28, %v941_v8 }
 0x158   :  { %v661_v31 = vrot.slane %v654_v29, %v941_v8 }
 0x15a   :  { %v663_v32 = vadd.f32 %v661_v31, %v576_v30 }
 0x15c   :  { %665 = vst.msk [vmem:[#allocation10] sm:$0x1] %vm60_vm4, %v663_v32 }
 0x15d   :  { %866 = shalt.err (!%p863_p10)
}
 0x15e   :  { %700 = dma.vmem_to_hbm [thread:$0]  %s698_s9, 16, %s1141_s4, [#allocation9]  }
 0x15f   :  { %879 = dma.done.wait [#allocation4], 64  }
 0x160   :  { %880 = vsyncadd [#allocation4], 4294967232 }
 0x161   :  { %881 = dma.done.wait [#allocation9], 528  }
 0x162   :  { %882 = vsyncadd [#allocation9], 4294966768 }
 0x163   :  { %710 = vsyncpa [#allocation3], 1 }
 0x164   :  { %711 = vsyncpa [#allocation6], 1 }
 0x165   :  { %712 = vsyncpa [#allocation4], 1 }
 0x166   :  { %713 = vsyncpa [#allocation9], 1 }

</bundles_post_ra>
